<compile_context>
chip_gen: v7x
topology: tpu7x:2x2x1
jax: 0.10.0
libtpu: 0.0.40
codegen_flags: <defaults>
</compile_context>

<pallas_src>
import jax
import jax.numpy as jnp
from jax.experimental import pallas as pl
from jax.experimental.pallas import tpu as pltpu


def _round_up(x, m):
    return ((x + m - 1) // m) * m


def _tiles(batch, hidden):
    """Choose (8,128)-aligned tiles and padded problem sizes.

    tn=256 keeps the v6e/v7x 256-wide MXU full (and is 2x128 on v5e);
    falls back to 128 when Hp is not a multiple of 256.
    """
    hp = _round_up(hidden, 128)
    tn = 256 if hp % 256 == 0 else 128
    tm = 256 if batch >= 256 else _round_up(batch, 8)
    bp = _round_up(batch, tm)
    return tm, tn, bp, hp


def _sampler_kernel(x_ref, w_ref, b_ref, nz_ref, out_ref):
    """Fused: both matmuls (bf16 MXU, f32 acc) + bias + exp + noise FMA.

    x_ref:  (tm, Hp)      bf16
    w_ref:  (2, Hp, tn)   bf16   [0]=W_log_scale^T tile, [1]=W_shift^T tile
    b_ref:  (2, tn)       f32    [0]=b_log_scale,        [1]=b_shift
    nz_ref: (1, tn)       f32    noise (broadcast over batch)
    out_ref:(tm, tn)      f32
    """
    x = x_ref[...]
    log_scale = (
        jnp.dot(x, w_ref[0], preferred_element_type=jnp.float32)
        + b_ref[0:1, :]
    )
    shift = (
        jnp.dot(x, w_ref[1], preferred_element_type=jnp.float32)
        + b_ref[1:2, :]
    )
    out_ref[...] = nz_ref[...] * jnp.exp(log_scale) + shift


def prepare_sampler_params(w_log_scale, b_log_scale, w_shift, b_shift):
    """One-time parameter prep (OUTSIDE the hot path).

    Transposes PyTorch [out, in] weights to [in, out], pads to lane multiples,
    stacks the two Linears into single operands, and casts weights to bf16.
    """
    hidden = w_log_scale.shape[0]
    _, _, _, hp = _tiles(1, hidden)

    def pad_t(w):
        return jnp.zeros((hp, hp), jnp.float32).at[:hidden, :hidden].set(w.T)

    w_stack = jnp.stack([pad_t(w_log_scale), pad_t(w_shift)]).astype(jnp.bfloat16)
    b_stack = (
        jnp.zeros((2, hp), jnp.float32)
        .at[0, :hidden].set(b_log_scale)
        .at[1, :hidden].set(b_shift)
    )
    return w_stack, b_stack


@jax.jit
def sampler_forward(x, w_stack, b_stack, noise):
    """Sampler forward pass as a single tiled Pallas kernel.

    Args:
      x:       [B, H] float32
      w_stack: [2, Hp, Hp] bfloat16 (from prepare_sampler_params)
      b_stack: [2, Hp]     float32  (from prepare_sampler_params)
      noise:   [H]         float32  (the randn([hidden_size]) draw)
    Returns:
      [B, H] float32 sample
    """
    batch = x.shape[0]
    hidden = noise.shape[0]
    hp = w_stack.shape[1]
    tm, tn, bp, hp_chk = _tiles(batch, hidden)
    assert hp_chk == hp, "params were prepared for a different hidden_size"

    # Pad activations / noise; cast x to bf16 for the MXU (cheap, halves x DMA).
    x_p = (
        jnp.zeros((bp, hp), jnp.bfloat16)
        .at[:batch, :hidden].set(x.astype(jnp.bfloat16))
    )
    nz_p = jnp.zeros((1, hp), jnp.float32).at[0, :hidden].set(noise)

    grid = (bp // tm, hp // tn)
    out = pl.pallas_call(
        _sampler_kernel,
        out_shape=jax.ShapeDtypeStruct((bp, hp), jnp.float32),
        grid=grid,
        in_specs=[
            pl.BlockSpec((tm, hp), lambda i, j: (i, 0)),        # x
            pl.BlockSpec((2, hp, tn), lambda i, j: (0, 0, j)),  # stacked weights
            pl.BlockSpec((2, tn), lambda i, j: (0, j)),         # stacked biases
            pl.BlockSpec((1, tn), lambda i, j: (0, j)),         # noise
        ],
        out_specs=pl.BlockSpec((tm, tn), lambda i, j: (i, j)),
        compiler_params=pltpu.CompilerParams(
            dimension_semantics=("parallel", "parallel"),
            vmem_limit_bytes=32 * 1024 * 1024,
        ),
    )(x_p, w_stack, b_stack, nz_p)

    return out[:batch, :hidden]


def sampler_ref(x, w_log_scale, b_log_scale, w_shift, b_shift, noise):
    """Pure-JAX f32 reference mirroring the PyTorch forward."""
    scale = jnp.exp(x @ w_log_scale.T + b_log_scale)
    shift = x @ w_shift.T + b_shift
    return noise[None, :] * scale + shift


if __name__ == "__main__":
    hidden_size = 32
    batch_size = 2

    key = jax.random.PRNGKey(0)
    k_x, k_wls, k_bls, k_wsh, k_bsh, k_nz = jax.random.split(key, 6)

    # Deterministic synthetic parameters (PyTorch Linear weight is [out, in]).
    bound = 1.0 / jnp.sqrt(hidden_size)
    x = jax.random.normal(k_x, (batch_size, hidden_size), jnp.float32)
    w_log_scale = jax.random.uniform(
        k_wls, (hidden_size, hidden_size), jnp.float32, -bound, bound)
    b_log_scale = jax.random.uniform(
        k_bls, (hidden_size,), jnp.float32, -bound, bound)
    w_shift = jax.random.uniform(
        k_wsh, (hidden_size, hidden_size), jnp.float32, -bound, bound)
    b_shift = jax.random.uniform(
        k_bsh, (hidden_size,), jnp.float32, -bound, bound)
    # torch.randn([hidden_size]) equivalent, drawn deterministically here and
    # passed in explicitly so the kernel stays testable against the reference.
    noise = jax.random.normal(k_nz, (hidden_size,), jnp.float32)

    # One-time parameter prep (transpose/pad/stack/bf16) — outside the hot path.
    w_stack, b_stack = prepare_sampler_params(
        w_log_scale, b_log_scale, w_shift, b_shift)

    out = sampler_forward(x, w_stack, b_stack, noise)
    out = jax.block_until_ready(out)

    ref = sampler_ref(x, w_log_scale, b_log_scale, w_shift, b_shift, noise)

    assert out.shape == (batch_size, hidden_size)
    assert out.dtype == jnp.float32
    # bf16 MXU operands (f32 accumulation) -> slightly looser tolerance vs f32 ref.
    assert jnp.allclose(out, ref, atol=5e-2, rtol=5e-2), float(
        jnp.max(jnp.abs(out - ref)))

    print("KERNEL_OK")
</pallas_src>

<mosaic_0001>
module attributes {stable_mosaic.version = 11 : i64} {
  func.func @_sampler_kernel(%arg0: i32, %arg1: i32, %arg2: memref<8x128xbf16, #tpu.memory_space<vmem>>, %arg3: memref<2x128x128xbf16, #tpu.memory_space<vmem>>, %arg4: memref<2x128xf32, #tpu.memory_space<vmem>>, %arg5: memref<1x128xf32, #tpu.memory_space<vmem>>, %arg6: memref<8x128xf32, #tpu.memory_space<vmem>>) attributes {dimension_semantics = [#tpu.dimension_semantics<parallel>, #tpu.dimension_semantics<parallel>], iteration_bounds = array<i64: 1, 1>, scalar_prefetch = 0 : i64, scratch_operands = 0 : i64, tpu.core_type = #tpu.core_type<tc>, window_params = [{transform_indices = @transform_0, window_bounds = array<i64: 8, 128>}, {transform_indices = @transform_1, window_bounds = array<i64: 2, 128, 128>}, {transform_indices = @transform_2, window_bounds = array<i64: 2, 128>}, {transform_indices = @transform_3, window_bounds = array<i64: 1, 128>}, {transform_indices = @transform_4, window_bounds = array<i64: 8, 128>}]} {
    %c0 = arith.constant 0 : index
    %c0_0 = arith.constant 0 : index
    %0 = vector.load %arg2[%c0, %c0_0] : memref<8x128xbf16, #tpu.memory_space<vmem>>, vector<8x128xbf16>
    %c0_1 = arith.constant 0 : index
    %c0_2 = arith.constant 0 : index
    %c0_3 = arith.constant 0 : index
    %1 = vector.load %arg3[%c0_1, %c0_2, %c0_3] : memref<2x128x128xbf16, #tpu.memory_space<vmem>>, vector<1x128x128xbf16>
    %2 = vector.shape_cast %1 : vector<1x128x128xbf16> to vector<128x128xbf16>
    %cst = arith.constant dense<0.000000e+00> : vector<8x128xf32>
    %3 = tpu.matmul %0, %2, %cst {dimension_numbers = #tpu.dot_dimension_numbers<[1], [0], [0], [1], [0, 0, 1, 1], [], []>} : vector<8x128xbf16>, vector<128x128xbf16>, vector<8x128xf32> -> vector<8x128xf32>
    %c0_4 = arith.constant 0 : index
    %c0_5 = arith.constant 0 : index
    %4 = vector.load %arg4[%c0_4, %c0_5] : memref<2x128xf32, #tpu.memory_space<vmem>>, vector<1x128xf32>
    %5 = vector.broadcast %4 : vector<1x128xf32> to vector<8x128xf32>
    %6 = arith.addf %3, %5 : vector<8x128xf32>
    %c1 = arith.constant 1 : index
    %c0_6 = arith.constant 0 : index
    %c0_7 = arith.constant 0 : index
    %7 = vector.load %arg3[%c1, %c0_6, %c0_7] : memref<2x128x128xbf16, #tpu.memory_space<vmem>>, vector<1x128x128xbf16>
    %8 = vector.shape_cast %7 : vector<1x128x128xbf16> to vector<128x128xbf16>
    %cst_8 = arith.constant dense<0.000000e+00> : vector<8x128xf32>
    %9 = tpu.matmul %0, %8, %cst_8 {dimension_numbers = #tpu.dot_dimension_numbers<[1], [0], [0], [1], [0, 0, 1, 1], [], []>} : vector<8x128xbf16>, vector<128x128xbf16>, vector<8x128xf32> -> vector<8x128xf32>
    %c1_9 = arith.constant 1 : index
    %c0_10 = arith.constant 0 : index
    %10 = vector.load %arg4[%c1_9, %c0_10] : memref<2x128xf32, #tpu.memory_space<vmem>>, vector<1x128xf32>
    %11 = vector.broadcast %10 : vector<1x128xf32> to vector<8x128xf32>
    %12 = arith.addf %9, %11 : vector<8x128xf32>
    %c0_11 = arith.constant 0 : index
    %c0_12 = arith.constant 0 : index
    %13 = vector.load %arg5[%c0_11, %c0_12] : memref<1x128xf32, #tpu.memory_space<vmem>>, vector<1x128xf32>
    %14 = math.exp %6 : vector<8x128xf32>
    %15 = vector.broadcast %13 : vector<1x128xf32> to vector<8x128xf32>
    %16 = arith.mulf %15, %14 : vector<8x128xf32>
    %17 = arith.addf %16, %12 : vector<8x128xf32>
    %c0_13 = arith.constant 0 : index
    %c0_14 = arith.constant 0 : index
    %18 = vector.load %arg6[%c0_13, %c0_14] : memref<8x128xf32, #tpu.memory_space<vmem>>, vector<8x128xf32>
    tpu.vector_store %arg6[%c0_13, %c0_14], %17 {strides = array<i32>} : memref<8x128xf32, #tpu.memory_space<vmem>>, vector<8x128xf32>,
    return
  }
  func.func @transform_0(%arg0: i32, %arg1: i32) -> (i32, i32) {
    %c0_i32 = arith.constant 0 : i32
    %c0_i32_0 = arith.constant 0 : i32
    return %arg0, %c0_i32 : i32, i32
  }
  func.func @transform_1(%arg0: i32, %arg1: i32) -> (i32, i32, i32) {
    %c0_i32 = arith.constant 0 : i32
    %c0_i32_0 = arith.constant 0 : i32
    %c0_i32_1 = arith.constant 0 : i32
    return %c0_i32, %c0_i32_0, %arg1 : i32, i32, i32
  }
  func.func @transform_2(%arg0: i32, %arg1: i32) -> (i32, i32) {
    %c0_i32 = arith.constant 0 : i32
    %c0_i32_0 = arith.constant 0 : i32
    return %c0_i32, %arg1 : i32, i32
  }
  func.func @transform_3(%arg0: i32, %arg1: i32) -> (i32, i32) {
    %c0_i32 = arith.constant 0 : i32
    %c0_i32_0 = arith.constant 0 : i32
    return %c0_i32, %arg1 : i32, i32
  }
  func.func @transform_4(%arg0: i32, %arg1: i32) -> (i32, i32) {
    %c0_i32 = arith.constant 0 : i32
    return %arg0, %arg1 : i32, i32
  }
}

</mosaic_0001>

<bundles_post_ra>
// kernel: sampler_forward.1
= control target key start
LH: loop header
LB: loop body
LE: loop exit
PB: predicated region body
PF: predicated region fallthrough
CT: control target
= control target key end

     0   :  { %9 = vsyncpa [#allocation3], 0  ;;  %s393_s15 = smov [#allocation2]   ;;  %s450_s0 = inlined_call_operand.vmem [shape: bf16[8,128], index: 0, kind: input, shape index: {}]   ;;  %s451_s1 = inlined_call_operand.hbm [shape: bf16[2,128,128], index: 1, kind: input, shape index: {}]   ;;  %s452_s2 = inlined_call_operand.vmem [shape: f32[2,128], index: 2, kind: input, shape index: {}]   ;;  %s453_s3 = inlined_call_operand.vmem [shape: f32[1,128], index: 3, kind: input, shape index: {}]   ;;  %s454_s4 = inlined_call_operand.vmem [shape: f32[8,128], index: 4, kind: output, shape index: {}]  }
   0x1   :  { %s17_s16 = sshll.u32 %s393_s15, 4  ;;  %s369_s19 = scalar_lea.hbm %s451_s1, 2048  ;;  %s18_s16 = int_to_ptr.vmem [resolvable:$true] %s17_s16 }
   0x2   :  { %p370_p0 = scmp.ne.s32.totalorder %s451_s1, %s369_s19  ;;  %p373_p1 = scmp.lt.u32.totalorder %s369_s19, %s451_s1 }
   0x4   :  { %p375_p2 = pnand %p373_p1, %p370_p0 }
   0x6   :  { %378 = shalt.err (!%p375_p2)
}
   0x7   :  { %s379_s24 = scalar_lea.vmem %s18_s16, 2048  ;;  %p384_p4 = scmp.lt.s32.totalorder %s18_s16, %s18_s16 }
   0x8   :  { %p380_p3 = scmp.ne.s32.totalorder %s18_s16, %s379_s24  ;;  %p385_p5 = scmp.lt.s32.totalorder %s379_s24, %s379_s24 }
   0xa   :  { %p386_p6 = por %p385_p5, %p384_p4 }
   0xc   :  { %p387_p7 = pnand %p386_p6, %p380_p3 }
   0xe   :  { %390 = shalt.err (!%p387_p7)
}
   0xf   :  { %s394_s25 = smov 64   ;;  %s395_s26 = smov 4  }
  0x10   :  { %23 = dma.hbm_to_vmem [thread:$0]  %s451_s1, 2048, %s18_s16, [#allocation3], %s394_s25, %s394_s25, %s395_s26  }
  0x11   :  { %391 = dma.done.wait [#allocation3], 2048  }
  0x12   :  { %392 = vsyncadd [#allocation3], 4294965248  ;;  %v396_v0 = vmov 0.0   ;;  %vm397_vm0 = vmmov 0   ;;  %v351_v1 = vld [vmem:[#allocation2] sm:$0xff]   ;;  %v352_v2 = vld [vmem:[#allocation2 + $0x8] sm:$0xff]  }
  0x13   :  { %306 = vmatprep.subr.bf16.mxu0 %v396_v0  ;;  %326 = vmatprep.subr.bf16.mxu1 %v396_v0  ;;  %v355_v3 = vld [vmem:[#allocation2 + $0x40] sm:$0xff]   ;;  %v353_v4 = vld [vmem:[#allocation2 + $0x10] sm:$0xff]   ;;  %v357_v5 = vld [vmem:[#allocation2 + $0x48] sm:$0xff]  }
  0x14   :  { %322 = vmatprep.mubr.msk.bf16.mxu0 %vm397_vm0, %v396_v0  ;;  %342 = vmatprep.mubr.msk.bf16.mxu1 %vm397_vm0, %v396_v0  ;;  %v354_v6 = vld [vmem:[#allocation2 + $0x18] sm:$0xff]   ;;  %v359_v7 = vld [vmem:[#allocation2 + $0x50] sm:$0xff]   ;;  %v356_v8 = vld [vmem:[#allocation2 + $0x20] sm:$0xff]  }
  0x15   :  { %307 = vmatpush3.bf16.msra.mxu0 %v351_v1  ;;  %327 = vmatpush3.bf16.msra.mxu1 %v355_v3  ;;  %v361_v9 = vld [vmem:[#allocation2 + $0x58] sm:$0xff]   ;;  %v358_v10 = vld [vmem:[#allocation2 + $0x28] sm:$0xff]   ;;  %v363_v11 = vld [vmem:[#allocation2 + $0x60] sm:$0xff]  }
  0x16   :  { %308 = vmatprep.subr.bf16.mxu0 %v396_v0  ;;  %328 = vmatprep.subr.bf16.mxu1 %v396_v0  ;;  %v360_v12 = vld [vmem:[#allocation2 + $0x30] sm:$0xff]   ;;  %v364_v13 = vld [vmem:[#allocation2 + $0x68] sm:$0xff]   ;;  %v362_v14 = vld [vmem:[#allocation2 + $0x38] sm:$0xff]  }
  0x17   :  { %v365_v15 = vld [vmem:[#allocation2 + $0x70] sm:$0xff]   ;;  %v32_v16 = vld [vmem:[%s450_s0] sm:$0xf]  ;;  %v366_v17 = vld [vmem:[#allocation2 + $0x78] sm:$0xff]  }
  0x18   :  { %v269_v18 = vld [vmem:[%s452_s2] ss:$0 sm:$0xff]  ;;  %v278_v29 = vld [vmem:[%s452_s2 + $0x1] ss:$0 sm:$0xff] }
  0x19   :  { %309 = vmatpush3.bf16.msra.mxu0 %v352_v2  ;;  %329 = vmatpush3.bf16.msra.mxu1 %v357_v5  ;;  %v287_v30 = vld [vmem:[%s453_s3] ss:$0 sm:$0xff] }
  0x1a   :  { %310 = vmatprep.subr.bf16.mxu0 %v396_v0  ;;  %330 = vmatprep.subr.bf16.mxu1 %v396_v0 }
  0x1d   :  { %311 = vmatpush3.bf16.msra.mxu0 %v353_v4  ;;  %331 = vmatpush3.bf16.msra.mxu1 %v359_v7 }
  0x1e   :  { %312 = vmatprep.subr.bf16.mxu0 %v396_v0  ;;  %332 = vmatprep.subr.bf16.mxu1 %v396_v0 }
  0x21   :  { %313 = vmatpush3.bf16.msra.mxu0 %v354_v6  ;;  %333 = vmatpush3.bf16.msra.mxu1 %v361_v9 }
  0x22   :  { %314 = vmatprep.subr.bf16.mxu0 %v396_v0  ;;  %334 = vmatprep.subr.bf16.mxu1 %v396_v0 }
  0x25   :  { %315 = vmatpush3.bf16.msra.mxu0 %v356_v8  ;;  %335 = vmatpush3.bf16.msra.mxu1 %v363_v11 }
  0x26   :  { %316 = vmatprep.subr.bf16.mxu0 %v396_v0  ;;  %336 = vmatprep.subr.bf16.mxu1 %v396_v0 }
  0x29   :  { %317 = vmatpush3.bf16.msra.mxu0 %v358_v10  ;;  %337 = vmatpush3.bf16.msra.mxu1 %v364_v13 }
  0x2a   :  { %318 = vmatprep.subr.bf16.mxu0 %v396_v0  ;;  %338 = vmatprep.subr.bf16.mxu1 %v396_v0 }
  0x2d   :  { %319 = vmatpush3.bf16.msra.mxu0 %v360_v12  ;;  %339 = vmatpush3.bf16.msra.mxu1 %v365_v15 }
  0x2e   :  { %320 = vmatprep.subr.bf16.mxu0 %v396_v0  ;;  %340 = vmatprep.subr.bf16.mxu1 %v396_v0 }
  0x31   :  { %321 = vmatpush3.bf16.msra.mxu0 %v362_v14  ;;  %341 = vmatpush3.bf16.msra.mxu1 %v366_v17 }
  0x34   :  { %323 = vmatmul.mubr.bf16.vlgmr.msra.gmra.mrb[0].mxu0 %v32_v16  ;;  %343 = vmatmul.mubr.bf16.vlgmr.msra.gmra.mrb[0].mxu1 %v32_v16 }
 0x107   :  { %v136_v19 = vpop.f32.mrb[0].mxu0  ;;  %v246_v25 = vpop.f32.mrb[0].mxu1 }
 0x108   :  { %v137_v20 = vadd.f32 %v269_v18, %v136_v19  ;;  %v324_v21 = vpop.f32.mrb[1].mxu0  ;;  %v344_v26 = vpop.f32.mrb[1].mxu1  ;;  %v247_v31 = vadd.f32 %v278_v29, %v246_v25 }
 0x109   :  { %v139_v22 = vpop.f32.mrb[2].mxu0  ;;  %v249_v27 = vpop.f32.mrb[2].mxu1 }
 0x10a   :  { %v253_v23 = vmul.f32 1.442695, %v137_v20  ;;  %v325_v24 = vpop.f32.mrb[3].mxu0  ;;  %v345_v28 = vpop.f32.mrb[3].mxu1 }
 0x10c   :  { %367 = vpow2.f32 %v253_v23 }
 0x116   :  { %v368_v32 = vpop.eup %367 }
 0x117   :  { %v261_v33 = vmul.f32 %v368_v32, %v287_v30 }
 0x119   :  { %v262_v34 = vadd.f32 %v261_v33, %v247_v31 }
 0x11b   :  { %263 = vst [vmem:[%s454_s4] sm:$0xff] %v262_v34 }
 0x11c   :  { %268 = vsyncpa [#allocation3], 1 }

</bundles_post_ra>
